<compile_context>
chip_gen: v7x
topology: tpu7x:2x2x1
jax: 0.10.0
libtpu: 0.0.40
codegen_flags: <defaults>
</compile_context>

<pallas_src>
import functools
import math

import jax
import jax.numpy as jnp
import numpy as np
from jax import lax
from jax.experimental import pallas as pl
from jax.experimental.pallas import tpu as pltpu


def _mha_kernel(xq_ref, xf_ref, wqT_ref, wkvT_ref, bq_ref, bkv_ref, woT_ref, bo_ref,
                out_ref, attnw_ref, *, num_heads):
    """One (batch, query-tile) element per grid step.

    xq_ref:   (1, TQ, E)  query rows of this tile
    xf_ref:   (1, S,  E)  full sequence (for K/V)
    wqT_ref:  (E, E)      Wq^T (pre-transposed in wrapper)
    wkvT_ref: (E, 2E)     [Wk; Wv]^T packed along columns
    bq_ref:   (1, E)      q bias
    bkv_ref:  (1, 2E)     packed k/v bias
    woT_ref:  (E, E)      out_proj.weight^T
    bo_ref:   (1, E)      out_proj.bias
    out_ref:  (1, TQ, E)
    attnw_ref:(1, TQ, S)
    """
    xq = xq_ref[0]                    # (TQ, E)
    xf = xf_ref[0]                    # (S, E)
    TQ, E = xq.shape
    S = xf.shape[0]
    H = num_heads
    Dh = E // H
    scale = 1.0 / math.sqrt(Dh)

    # In-projection (weights pre-transposed -> plain NN matmuls on the MXU).
    q = jnp.dot(xq, wqT_ref[...], preferred_element_type=jnp.float32) + bq_ref[0]
    q = q * scale                     # torch scales q (after bias) by 1/sqrt(head_dim)
    kv = jnp.dot(xf, wkvT_ref[...], preferred_element_type=jnp.float32) + bkv_ref[0]
    k = kv[:, 0:E]                    # (S, E)
    v = kv[:, E:2 * E]                # (S, E)

    woT = woT_ref[...]                # (E, E)
    out_acc = jnp.zeros((TQ, E), dtype=jnp.float32)
    attn_acc = jnp.zeros((TQ, S), dtype=jnp.float32)

    # Static head loop; per-head tensors are consumed immediately (no concatenate,
    # no H simultaneously-live score matrices).
    for h in range(H):
        sl = slice(h * Dh, (h + 1) * Dh)
        qh = q[:, sl]                 # (TQ, Dh)
        kh = k[:, sl]                 # (S, Dh)
        vh = v[:, sl]                 # (S, Dh)

        # q @ k^T via NT contraction -- no materialized transpose.
        s = lax.dot_general(qh, kh, (((1,), (1,)), ((), ())),
                            preferred_element_type=jnp.float32)       # (TQ, S)

        # numerically stable softmax; denominator reciprocal on the EUP.
        s = s - jnp.max(s, axis=-1, keepdims=True)
        p = jnp.exp(s)
        denom = jnp.sum(p, axis=-1, keepdims=True)                    # (TQ, 1)
        r = pl.reciprocal(denom, approx=True)
        r = r * (2.0 - denom * r)     # one Newton step -> ~f32-exact reciprocal
        p = p * r

        attn_acc = attn_acc + p
        oh = jnp.dot(p, vh, preferred_element_type=jnp.float32)       # (TQ, Dh)
        # Fold the out-projection into the head loop (same FLOPs, no concat).
        out_acc = out_acc + jnp.dot(oh, woT[sl, :],
                                    preferred_element_type=jnp.float32)

    out_ref[0] = (out_acc + bo_ref[0]).astype(out_ref.dtype)
    attnw_ref[0] = (attn_acc * (1.0 / H)).astype(attnw_ref.dtype)


def _choose_query_tile(S):
    for cand in (256, 128):
        if S % cand == 0:
            return cand
    return S


def _vmem_estimate_bytes(S, E, TQ, bytes_per_elem=4):
    # double-buffered pipeline inputs/outputs + rough in-kernel temporaries
    ins = TQ * E + S * E + E * E + 2 * E * E + E + 2 * E + E * E + E
    outs = TQ * E + TQ * S
    tmps = 2 * S * E + 3 * TQ * S + 3 * TQ * E
    return bytes_per_elem * (2 * (ins + outs) + tmps)


def self_multihead_attention(x, w_in, b_in, wo, bo, *, num_heads):
    """x: (B, S, E). w_in: (3E, E) torch in_proj_weight, b_in: (3E,), wo: (E, E),
    bo: (E,). Returns (attn_output (B,S,E), attn_weights (B,S,S))."""
    B, S, E = x.shape
    assert E % num_heads == 0, "embed_dim must be divisible by num_heads"

    # Pre-transpose / repack parameters outside the kernel (done once by XLA).
    w_qT = jnp.transpose(w_in[0:E])           # (E, E)
    w_kvT = jnp.transpose(w_in[E:3 * E])      # (E, 2E)  fused K/V projection weight
    woT = jnp.transpose(wo)                   # (E, E)
    b_q = b_in[0:E].reshape(1, E)
    b_kv = b_in[E:3 * E].reshape(1, 2 * E)
    bo2 = bo.reshape(1, E)

    TQ = _choose_query_tile(S)
    n_q = S // TQ

    est = _vmem_estimate_bytes(S, E, TQ)
    vmem_limit = None
    if est > 12 * 1024 * 1024:
        vmem_limit = int(min(2 * est, 48 * 1024 * 1024))

    kernel = functools.partial(_mha_kernel, num_heads=num_heads)
    out, attnw = pl.pallas_call(
        kernel,
        out_shape=(
            jax.ShapeDtypeStruct((B, S, E), x.dtype),
            jax.ShapeDtypeStruct((B, S, S), x.dtype),
        ),
        grid_spec=pltpu.PrefetchScalarGridSpec(
            num_scalar_prefetch=0,
            grid=(B, n_q),
            in_specs=[
                pl.BlockSpec((1, TQ, E), lambda b, qi: (b, qi, 0)),   # x (query tile)
                pl.BlockSpec((1, S, E), lambda b, qi: (b, 0, 0)),     # x (full, K/V)
                pl.BlockSpec((E, E), lambda b, qi: (0, 0)),           # Wq^T
                pl.BlockSpec((E, 2 * E), lambda b, qi: (0, 0)),       # [Wk;Wv]^T
                pl.BlockSpec((1, E), lambda b, qi: (0, 0)),           # b_q
                pl.BlockSpec((1, 2 * E), lambda b, qi: (0, 0)),       # b_kv
                pl.BlockSpec((E, E), lambda b, qi: (0, 0)),           # Wo^T
                pl.BlockSpec((1, E), lambda b, qi: (0, 0)),           # b_o
            ],
            out_specs=[
                pl.BlockSpec((1, TQ, E), lambda b, qi: (b, qi, 0)),
                pl.BlockSpec((1, TQ, S), lambda b, qi: (b, qi, 0)),
            ],
        ),
        compiler_params=pltpu.CompilerParams(
            dimension_semantics=("parallel", "parallel"),
            vmem_limit_bytes=vmem_limit),
    )(x, x, w_qT, w_kvT, b_q, b_kv, woT, bo2)
    return out, attnw


def _reference(x, w_in, b_in, wo, bo, num_heads):
    """Pure-JAX reference mirroring torch F.multi_head_attention_forward."""
    B, S, E = x.shape
    Dh = E // num_heads
    q = x @ w_in[0:E].T + b_in[0:E]
    k = x @ w_in[E:2 * E].T + b_in[E:2 * E]
    v = x @ w_in[2 * E:3 * E].T + b_in[2 * E:3 * E]
    q = q / math.sqrt(Dh)

    def split(t):  # (B,S,E) -> (B,H,S,Dh)
        return t.reshape(B, S, num_heads, Dh).transpose(0, 2, 1, 3)

    qh, kh, vh = split(q), split(k), split(v)
    scores = jnp.einsum("bhqd,bhkd->bhqk", qh, kh)
    p = jax.nn.softmax(scores, axis=-1)
    o = jnp.einsum("bhqk,bhkd->bhqd", p, vh)
    o = o.transpose(0, 2, 1, 3).reshape(B, S, E)
    out = o @ wo.T + bo
    return out, p.mean(axis=1)


if __name__ == "__main__":
    B, S, E, H = 2, 8, 32, 4
    key = jax.random.PRNGKey(0)
    kx, k1, k2, k3, k4 = jax.random.split(key, 5)

    x = jax.random.normal(kx, (B, S, E), dtype=jnp.float32)

    # deterministic synthetic parameters (xavier-ish scale)
    w_in = jax.random.normal(k1, (3 * E, E), dtype=jnp.float32) * (1.0 / math.sqrt(E))
    b_in = jax.random.normal(k2, (3 * E,), dtype=jnp.float32) * 0.02
    wo = jax.random.normal(k3, (E, E), dtype=jnp.float32) * (1.0 / math.sqrt(E))
    bo = jax.random.normal(k4, (E,), dtype=jnp.float32) * 0.02

    out, attnw = self_multihead_attention(x, w_in, b_in, wo, bo, num_heads=H)
    out = jax.block_until_ready(out)
    attnw = jax.block_until_ready(attnw)

    ref_out, ref_w = _reference(x, w_in, b_in, wo, bo, H)
    np.testing.assert_allclose(np.asarray(out), np.asarray(ref_out), atol=2e-4, rtol=2e-4)
    np.testing.assert_allclose(np.asarray(attnw), np.asarray(ref_w), atol=2e-5, rtol=2e-5)

    print("KERNEL_OK")
</pallas_src>

<mosaic_0001>
module attributes {stable_mosaic.version = 11 : i64} {
  func.func @_mha_kernel(%arg0: i32, %arg1: i32, %arg2: memref<1x8x32xf32, #tpu.memory_space<vmem>>, %arg3: memref<1x8x32xf32, #tpu.memory_space<vmem>>, %arg4: memref<32x32xf32, #tpu.memory_space<vmem>>, %arg5: memref<32x64xf32, #tpu.memory_space<vmem>>, %arg6: memref<1x32xf32, #tpu.memory_space<vmem>>, %arg7: memref<1x64xf32, #tpu.memory_space<vmem>>, %arg8: memref<32x32xf32, #tpu.memory_space<vmem>>, %arg9: memref<1x32xf32, #tpu.memory_space<vmem>>, %arg10: memref<1x8x32xf32, #tpu.memory_space<vmem>>, %arg11: memref<1x8x8xf32, #tpu.memory_space<vmem>>) attributes {dimension_semantics = [#tpu.dimension_semantics<parallel>, #tpu.dimension_semantics<parallel>], iteration_bounds = array<i64: 2, 1>, scalar_prefetch = 0 : i64, scratch_operands = 0 : i64, tpu.core_type = #tpu.core_type<tc>, window_params = [{transform_indices = @transform_0, window_bounds = array<i64: 1, 8, 32>}, {transform_indices = @transform_1, window_bounds = array<i64: 1, 8, 32>}, {pipeline_mode = #tpu.pipeline_mode<synchronous>, transform_indices = @transform_2, window_bounds = array<i64: 32, 32>}, {pipeline_mode = #tpu.pipeline_mode<synchronous>, transform_indices = @transform_3, window_bounds = array<i64: 32, 64>}, {pipeline_mode = #tpu.pipeline_mode<synchronous>, transform_indices = @transform_4, window_bounds = array<i64: 1, 32>}, {pipeline_mode = #tpu.pipeline_mode<synchronous>, transform_indices = @transform_5, window_bounds = array<i64: 1, 64>}, {pipeline_mode = #tpu.pipeline_mode<synchronous>, transform_indices = @transform_6, window_bounds = array<i64: 32, 32>}, {pipeline_mode = #tpu.pipeline_mode<synchronous>, transform_indices = @transform_7, window_bounds = array<i64: 1, 32>}, {transform_indices = @transform_8, window_bounds = array<i64: 1, 8, 32>}, {transform_indices = @transform_9, window_bounds = array<i64: 1, 8, 8>}]} {
    %c0 = arith.constant 0 : index
    %c0_0 = arith.constant 0 : index
    %c0_1 = arith.constant 0 : index
    %0 = vector.load %arg2[%c0, %c0_0, %c0_1] : memref<1x8x32xf32, #tpu.memory_space<vmem>>, vector<1x8x32xf32>
    %1 = vector.shape_cast %0 : vector<1x8x32xf32> to vector<8x32xf32>
    %c0_2 = arith.constant 0 : index
    %c0_3 = arith.constant 0 : index
    %c0_4 = arith.constant 0 : index
    %2 = vector.load %arg3[%c0_2, %c0_3, %c0_4] : memref<1x8x32xf32, #tpu.memory_space<vmem>>, vector<1x8x32xf32>
    %3 = vector.shape_cast %2 : vector<1x8x32xf32> to vector<8x32xf32>
    %c0_5 = arith.constant 0 : index
    %c0_6 = arith.constant 0 : index
    %4 = vector.load %arg4[%c0_5, %c0_6] : memref<32x32xf32, #tpu.memory_space<vmem>>, vector<32x32xf32>
    %cst = arith.constant dense<0.000000e+00> : vector<8x32xf32>
    %5 = tpu.matmul %1, %4, %cst {dimension_numbers = #tpu.dot_dimension_numbers<[1], [0], [0], [1], [0, 0, 1, 1], [], []>} : vector<8x32xf32>, vector<32x32xf32>, vector<8x32xf32> -> vector<8x32xf32>
    %c0_7 = arith.constant 0 : index
    %c0_8 = arith.constant 0 : index
    %6 = vector.load %arg6[%c0_7, %c0_8] : memref<1x32xf32, #tpu.memory_space<vmem>>, vector<1x32xf32>
    %7 = vector.shape_cast %6 : vector<1x32xf32> to vector<32xf32>
    %8 = vector.shape_cast %7 : vector<32xf32> to vector<1x32xf32>
    %9 = vector.broadcast %8 : vector<1x32xf32> to vector<8x32xf32>
    %10 = arith.addf %5, %9 : vector<8x32xf32>
    %cst_9 = arith.constant 0.353553385 : f32
    %11 = vector.broadcast %cst_9 : f32 to vector<8x32xf32>
    %12 = arith.mulf %10, %11 : vector<8x32xf32>
    %c0_10 = arith.constant 0 : index
    %c0_11 = arith.constant 0 : index
    %13 = vector.load %arg5[%c0_10, %c0_11] : memref<32x64xf32, #tpu.memory_space<vmem>>, vector<32x64xf32>
    %cst_12 = arith.constant dense<0.000000e+00> : vector<8x64xf32>
    %14 = tpu.matmul %3, %13, %cst_12 {dimension_numbers = #tpu.dot_dimension_numbers<[1], [0], [0], [1], [0, 0, 1, 1], [], []>} : vector<8x32xf32>, vector<32x64xf32>, vector<8x64xf32> -> vector<8x64xf32>
    %c0_13 = arith.constant 0 : index
    %c0_14 = arith.constant 0 : index
    %15 = vector.load %arg7[%c0_13, %c0_14] : memref<1x64xf32, #tpu.memory_space<vmem>>, vector<1x64xf32>
    %16 = vector.shape_cast %15 : vector<1x64xf32> to vector<64xf32>
    %17 = vector.shape_cast %16 : vector<64xf32> to vector<1x64xf32>
    %18 = vector.broadcast %17 : vector<1x64xf32> to vector<8x64xf32>
    %19 = arith.addf %14, %18 : vector<8x64xf32>
    %20 = vector.extract_strided_slice %19 {offsets = [0, 0], sizes = [8, 32], strides = [1, 1]} : vector<8x64xf32> to vector<8x32xf32>
    %21 = vector.extract_strided_slice %19 {offsets = [0, 32], sizes = [8, 32], strides = [1, 1]} : vector<8x64xf32> to vector<8x32xf32>
    %c0_15 = arith.constant 0 : index
    %c0_16 = arith.constant 0 : index
    %22 = vector.load %arg8[%c0_15, %c0_16] : memref<32x32xf32, #tpu.memory_space<vmem>>, vector<32x32xf32>
    %cst_17 = arith.constant 0.000000e+00 : f32
    %23 = vector.broadcast %cst_17 : f32 to vector<8x32xf32>
    %cst_18 = arith.constant 0.000000e+00 : f32
    %24 = vector.broadcast %cst_18 : f32 to vector<8x8xf32>
    %25 = vector.extract_strided_slice %12 {offsets = [0, 0], sizes = [8, 8], strides = [1, 1]} : vector<8x32xf32> to vector<8x8xf32>
    %26 = vector.extract_strided_slice %20 {offsets = [0, 0], sizes = [8, 8], strides = [1, 1]} : vector<8x32xf32> to vector<8x8xf32>
    %27 = vector.extract_strided_slice %21 {offsets = [0, 0], sizes = [8, 8], strides = [1, 1]} : vector<8x32xf32> to vector<8x8xf32>
    %cst_19 = arith.constant dense<0.000000e+00> : vector<8x8xf32>
    %28 = tpu.matmul %25, %26, %cst_19 {dimension_numbers = #tpu.dot_dimension_numbers<[1], [1], [0], [0], [0, 0, 1, 0], [], []>} : vector<8x8xf32>, vector<8x8xf32>, vector<8x8xf32> -> vector<8x8xf32>
    %cst_20 = arith.constant dense<0xFF800000> : vector<8xf32>
    %29 = vector.multi_reduction <maximumf>, %28, %cst_20 [1] : vector<8x8xf32> to vector<8xf32>
    %30 = vector.shape_cast %29 : vector<8xf32> to vector<8x1xf32>
    %31 = vector.broadcast %30 : vector<8x1xf32> to vector<8x8xf32>
    %32 = arith.subf %28, %31 : vector<8x8xf32>
    %33 = math.exp %32 : vector<8x8xf32>
    %cst_21 = arith.constant dense<0.000000e+00> : vector<8xf32>
    %34 = vector.multi_reduction <add>, %33, %cst_21 [1] : vector<8x8xf32> to vector<8xf32>
    %35 = vector.shape_cast %34 : vector<8xf32> to vector<8x1xf32>
    %36 = tpu.reciprocal %35 {approx = true} : vector<8x1xf32> -> vector<8x1xf32>
    %37 = arith.mulf %35, %36 : vector<8x1xf32>
    %cst_22 = arith.constant 2.000000e+00 : f32
    %38 = vector.broadcast %cst_22 : f32 to vector<8x1xf32>
    %39 = arith.subf %38, %37 : vector<8x1xf32>
    %40 = arith.mulf %36, %39 : vector<8x1xf32>
    %41 = vector.broadcast %40 : vector<8x1xf32> to vector<8x8xf32>
    %42 = arith.mulf %33, %41 : vector<8x8xf32>
    %43 = arith.addf %24, %42 : vector<8x8xf32>
    %cst_23 = arith.constant dense<0.000000e+00> : vector<8x8xf32>
    %44 = tpu.matmul %42, %27, %cst_23 {dimension_numbers = #tpu.dot_dimension_numbers<[1], [0], [0], [1], [0, 0, 1, 1], [], []>} : vector<8x8xf32>, vector<8x8xf32>, vector<8x8xf32> -> vector<8x8xf32>
    %45 = vector.extract_strided_slice %22 {offsets = [0, 0], sizes = [8, 32], strides = [1, 1]} : vector<32x32xf32> to vector<8x32xf32>
    %cst_24 = arith.constant dense<0.000000e+00> : vector<8x32xf32>
    %46 = tpu.matmul %44, %45, %cst_24 {dimension_numbers = #tpu.dot_dimension_numbers<[1], [0], [0], [1], [0, 0, 1, 1], [], []>} : vector<8x8xf32>, vector<8x32xf32>, vector<8x32xf32> -> vector<8x32xf32>
    %47 = arith.addf %23, %46 : vector<8x32xf32>
    %48 = vector.extract_strided_slice %12 {offsets = [0, 8], sizes = [8, 8], strides = [1, 1]} : vector<8x32xf32> to vector<8x8xf32>
    %49 = vector.extract_strided_slice %20 {offsets = [0, 8], sizes = [8, 8], strides = [1, 1]} : vector<8x32xf32> to vector<8x8xf32>
    %50 = vector.extract_strided_slice %21 {offsets = [0, 8], sizes = [8, 8], strides = [1, 1]} : vector<8x32xf32> to vector<8x8xf32>
    %cst_25 = arith.constant dense<0.000000e+00> : vector<8x8xf32>
    %51 = tpu.matmul %48, %49, %cst_25 {dimension_numbers = #tpu.dot_dimension_numbers<[1], [1], [0], [0], [0, 0, 1, 0], [], []>} : vector<8x8xf32>, vector<8x8xf32>, vector<8x8xf32> -> vector<8x8xf32>
    %cst_26 = arith.constant dense<0xFF800000> : vector<8xf32>
    %52 = vector.multi_reduction <maximumf>, %51, %cst_26 [1] : vector<8x8xf32> to vector<8xf32>
    %53 = vector.shape_cast %52 : vector<8xf32> to vector<8x1xf32>
    %54 = vector.broadcast %53 : vector<8x1xf32> to vector<8x8xf32>
    %55 = arith.subf %51, %54 : vector<8x8xf32>
    %56 = math.exp %55 : vector<8x8xf32>
    %cst_27 = arith.constant dense<0.000000e+00> : vector<8xf32>
    %57 = vector.multi_reduction <add>, %56, %cst_27 [1] : vector<8x8xf32> to vector<8xf32>
    %58 = vector.shape_cast %57 : vector<8xf32> to vector<8x1xf32>
    %59 = tpu.reciprocal %58 {approx = true} : vector<8x1xf32> -> vector<8x1xf32>
    %60 = arith.mulf %58, %59 : vector<8x1xf32>
    %cst_28 = arith.constant 2.000000e+00 : f32
    %61 = vector.broadcast %cst_28 : f32 to vector<8x1xf32>
    %62 = arith.subf %61, %60 : vector<8x1xf32>
    %63 = arith.mulf %59, %62 : vector<8x1xf32>
    %64 = vector.broadcast %63 : vector<8x1xf32> to vector<8x8xf32>
    %65 = arith.mulf %56, %64 : vector<8x8xf32>
    %66 = arith.addf %43, %65 : vector<8x8xf32>
    %cst_29 = arith.constant dense<0.000000e+00> : vector<8x8xf32>
    %67 = tpu.matmul %65, %50, %cst_29 {dimension_numbers = #tpu.dot_dimension_numbers<[1], [0], [0], [1], [0, 0, 1, 1], [], []>} : vector<8x8xf32>, vector<8x8xf32>, vector<8x8xf32> -> vector<8x8xf32>
    %68 = vector.extract_strided_slice %22 {offsets = [8, 0], sizes = [8, 32], strides = [1, 1]} : vector<32x32xf32> to vector<8x32xf32>
    %cst_30 = arith.constant dense<0.000000e+00> : vector<8x32xf32>
    %69 = tpu.matmul %67, %68, %cst_30 {dimension_numbers = #tpu.dot_dimension_numbers<[1], [0], [0], [1], [0, 0, 1, 1], [], []>} : vector<8x8xf32>, vector<8x32xf32>, vector<8x32xf32> -> vector<8x32xf32>
    %70 = arith.addf %47, %69 : vector<8x32xf32>
    %71 = vector.extract_strided_slice %12 {offsets = [0, 16], sizes = [8, 8], strides = [1, 1]} : vector<8x32xf32> to vector<8x8xf32>
    %72 = vector.extract_strided_slice %20 {offsets = [0, 16], sizes = [8, 8], strides = [1, 1]} : vector<8x32xf32> to vector<8x8xf32>
    %73 = vector.extract_strided_slice %21 {offsets = [0, 16], sizes = [8, 8], strides = [1, 1]} : vector<8x32xf32> to vector<8x8xf32>
    %cst_31 = arith.constant dense<0.000000e+00> : vector<8x8xf32>
    %74 = tpu.matmul %71, %72, %cst_31 {dimension_numbers = #tpu.dot_dimension_numbers<[1], [1], [0], [0], [0, 0, 1, 0], [], []>} : vector<8x8xf32>, vector<8x8xf32>, vector<8x8xf32> -> vector<8x8xf32>
    %cst_32 = arith.constant dense<0xFF800000> : vector<8xf32>
    %75 = vector.multi_reduction <maximumf>, %74, %cst_32 [1] : vector<8x8xf32> to vector<8xf32>
    %76 = vector.shape_cast %75 : vector<8xf32> to vector<8x1xf32>
    %77 = vector.broadcast %76 : vector<8x1xf32> to vector<8x8xf32>
    %78 = arith.subf %74, %77 : vector<8x8xf32>
    %79 = math.exp %78 : vector<8x8xf32>
    %cst_33 = arith.constant dense<0.000000e+00> : vector<8xf32>
    %80 = vector.multi_reduction <add>, %79, %cst_33 [1] : vector<8x8xf32> to vector<8xf32>
    %81 = vector.shape_cast %80 : vector<8xf32> to vector<8x1xf32>
    %82 = tpu.reciprocal %81 {approx = true} : vector<8x1xf32> -> vector<8x1xf32>
    %83 = arith.mulf %81, %82 : vector<8x1xf32>
    %cst_34 = arith.constant 2.000000e+00 : f32
    %84 = vector.broadcast %cst_34 : f32 to vector<8x1xf32>
    %85 = arith.subf %84, %83 : vector<8x1xf32>
    %86 = arith.mulf %82, %85 : vector<8x1xf32>
    %87 = vector.broadcast %86 : vector<8x1xf32> to vector<8x8xf32>
    %88 = arith.mulf %79, %87 : vector<8x8xf32>
    %89 = arith.addf %66, %88 : vector<8x8xf32>
    %cst_35 = arith.constant dense<0.000000e+00> : vector<8x8xf32>
    %90 = tpu.matmul %88, %73, %cst_35 {dimension_numbers = #tpu.dot_dimension_numbers<[1], [0], [0], [1], [0, 0, 1, 1], [], []>} : vector<8x8xf32>, vector<8x8xf32>, vector<8x8xf32> -> vector<8x8xf32>
    %91 = vector.extract_strided_slice %22 {offsets = [16, 0], sizes = [8, 32], strides = [1, 1]} : vector<32x32xf32> to vector<8x32xf32>
    %cst_36 = arith.constant dense<0.000000e+00> : vector<8x32xf32>
    %92 = tpu.matmul %90, %91, %cst_36 {dimension_numbers = #tpu.dot_dimension_numbers<[1], [0], [0], [1], [0, 0, 1, 1], [], []>} : vector<8x8xf32>, vector<8x32xf32>, vector<8x32xf32> -> vector<8x32xf32>
    %93 = arith.addf %70, %92 : vector<8x32xf32>
    %94 = vector.extract_strided_slice %12 {offsets = [0, 24], sizes = [8, 8], strides = [1, 1]} : vector<8x32xf32> to vector<8x8xf32>
    %95 = vector.extract_strided_slice %20 {offsets = [0, 24], sizes = [8, 8], strides = [1, 1]} : vector<8x32xf32> to vector<8x8xf32>
    %96 = vector.extract_strided_slice %21 {offsets = [0, 24], sizes = [8, 8], strides = [1, 1]} : vector<8x32xf32> to vector<8x8xf32>
    %cst_37 = arith.constant dense<0.000000e+00> : vector<8x8xf32>
    %97 = tpu.matmul %94, %95, %cst_37 {dimension_numbers = #tpu.dot_dimension_numbers<[1], [1], [0], [0], [0, 0, 1, 0], [], []>} : vector<8x8xf32>, vector<8x8xf32>, vector<8x8xf32> -> vector<8x8xf32>
    %cst_38 = arith.constant dense<0xFF800000> : vector<8xf32>
    %98 = vector.multi_reduction <maximumf>, %97, %cst_38 [1] : vector<8x8xf32> to vector<8xf32>
    %99 = vector.shape_cast %98 : vector<8xf32> to vector<8x1xf32>
    %100 = vector.broadcast %99 : vector<8x1xf32> to vector<8x8xf32>
    %101 = arith.subf %97, %100 : vector<8x8xf32>
    %102 = math.exp %101 : vector<8x8xf32>
    %cst_39 = arith.constant dense<0.000000e+00> : vector<8xf32>
    %103 = vector.multi_reduction <add>, %102, %cst_39 [1] : vector<8x8xf32> to vector<8xf32>
    %104 = vector.shape_cast %103 : vector<8xf32> to vector<8x1xf32>
    %105 = tpu.reciprocal %104 {approx = true} : vector<8x1xf32> -> vector<8x1xf32>
    %106 = arith.mulf %104, %105 : vector<8x1xf32>
    %cst_40 = arith.constant 2.000000e+00 : f32
    %107 = vector.broadcast %cst_40 : f32 to vector<8x1xf32>
    %108 = arith.subf %107, %106 : vector<8x1xf32>
    %109 = arith.mulf %105, %108 : vector<8x1xf32>
    %110 = vector.broadcast %109 : vector<8x1xf32> to vector<8x8xf32>
    %111 = arith.mulf %102, %110 : vector<8x8xf32>
    %112 = arith.addf %89, %111 : vector<8x8xf32>
    %cst_41 = arith.constant dense<0.000000e+00> : vector<8x8xf32>
    %113 = tpu.matmul %111, %96, %cst_41 {dimension_numbers = #tpu.dot_dimension_numbers<[1], [0], [0], [1], [0, 0, 1, 1], [], []>} : vector<8x8xf32>, vector<8x8xf32>, vector<8x8xf32> -> vector<8x8xf32>
    %114 = vector.extract_strided_slice %22 {offsets = [24, 0], sizes = [8, 32], strides = [1, 1]} : vector<32x32xf32> to vector<8x32xf32>
    %cst_42 = arith.constant dense<0.000000e+00> : vector<8x32xf32>
    %115 = tpu.matmul %113, %114, %cst_42 {dimension_numbers = #tpu.dot_dimension_numbers<[1], [0], [0], [1], [0, 0, 1, 1], [], []>} : vector<8x8xf32>, vector<8x32xf32>, vector<8x32xf32> -> vector<8x32xf32>
    %116 = arith.addf %93, %115 : vector<8x32xf32>
    %c0_43 = arith.constant 0 : index
    %c0_44 = arith.constant 0 : index
    %117 = vector.load %arg9[%c0_43, %c0_44] : memref<1x32xf32, #tpu.memory_space<vmem>>, vector<1x32xf32>
    %118 = vector.shape_cast %117 : vector<1x32xf32> to vector<32xf32>
    %119 = vector.shape_cast %118 : vector<32xf32> to vector<1x32xf32>
    %120 = vector.broadcast %119 : vector<1x32xf32> to vector<8x32xf32>
    %121 = arith.addf %116, %120 : vector<8x32xf32>
    %c0_45 = arith.constant 0 : index
    %c0_46 = arith.constant 0 : index
    %c0_47 = arith.constant 0 : index
    %122 = vector.load %arg10[%c0_45, %c0_46, %c0_47] : memref<1x8x32xf32, #tpu.memory_space<vmem>>, vector<1x8x32xf32>
    %123 = vector.shape_cast %122 : vector<1x8x32xf32> to vector<8x32xf32>
    %124 = vector.shape_cast %121 : vector<8x32xf32> to vector<1x8x32xf32>
    tpu.vector_store %arg10[%c0_45, %c0_46, %c0_47], %124 {strides = array<i32>} : memref<1x8x32xf32, #tpu.memory_space<vmem>>, vector<1x8x32xf32>,
    %cst_48 = arith.constant 2.500000e-01 : f32
    %125 = vector.broadcast %cst_48 : f32 to vector<8x8xf32>
    %126 = arith.mulf %112, %125 : vector<8x8xf32>
    %c0_49 = arith.constant 0 : index
    %c0_50 = arith.constant 0 : index
    %c0_51 = arith.constant 0 : index
    %127 = vector.load %arg11[%c0_49, %c0_50, %c0_51] : memref<1x8x8xf32, #tpu.memory_space<vmem>>, vector<1x8x8xf32>
    %128 = vector.shape_cast %127 : vector<1x8x8xf32> to vector<8x8xf32>
    %129 = vector.shape_cast %126 : vector<8x8xf32> to vector<1x8x8xf32>
    tpu.vector_store %arg11[%c0_49, %c0_50, %c0_51], %129 {strides = array<i32>} : memref<1x8x8xf32, #tpu.memory_space<vmem>>, vector<1x8x8xf32>,
    return
  }
  func.func @transform_0(%arg0: i32, %arg1: i32) -> (i32, i32, i32) {
    %c0_i32 = arith.constant 0 : i32
    %c0_i32_0 = arith.constant 0 : i32
    return %arg0, %arg1, %c0_i32 : i32, i32, i32
  }
  func.func @transform_1(%arg0: i32, %arg1: i32) -> (i32, i32, i32) {
    %c0_i32 = arith.constant 0 : i32
    %c0_i32_0 = arith.constant 0 : i32
    %c0_i32_1 = arith.constant 0 : i32
    return %arg0, %c0_i32, %c0_i32_0 : i32, i32, i32
  }
  func.func @transform_2(%arg0: i32, %arg1: i32) -> (i32, i32) {
    %c0_i32 = arith.constant 0 : i32
    %c0_i32_0 = arith.constant 0 : i32
    %c0_i32_1 = arith.constant 0 : i32
    return %c0_i32, %c0_i32_0 : i32, i32
  }
  func.func @transform_3(%arg0: i32, %arg1: i32) -> (i32, i32) {
    %c0_i32 = arith.constant 0 : i32
    %c0_i32_0 = arith.constant 0 : i32
    %c0_i32_1 = arith.constant 0 : i32
    return %c0_i32, %c0_i32_0 : i32, i32
  }
  func.func @transform_4(%arg0: i32, %arg1: i32) -> (i32, i32) {
    %c0_i32 = arith.constant 0 : i32
    %c0_i32_0 = arith.constant 0 : i32
    %c0_i32_1 = arith.constant 0 : i32
    return %c0_i32, %c0_i32_0 : i32, i32
  }
  func.func @transform_5(%arg0: i32, %arg1: i32) -> (i32, i32) {
    %c0_i32 = arith.constant 0 : i32
    %c0_i32_0 = arith.constant 0 : i32
    %c0_i32_1 = arith.constant 0 : i32
    return %c0_i32, %c0_i32_0 : i32, i32
  }
  func.func @transform_6(%arg0: i32, %arg1: i32) -> (i32, i32) {
    %c0_i32 = arith.constant 0 : i32
    %c0_i32_0 = arith.constant 0 : i32
    %c0_i32_1 = arith.constant 0 : i32
    return %c0_i32, %c0_i32_0 : i32, i32
  }
  func.func @transform_7(%arg0: i32, %arg1: i32) -> (i32, i32) {
    %c0_i32 = arith.constant 0 : i32
    %c0_i32_0 = arith.constant 0 : i32
    %c0_i32_1 = arith.constant 0 : i32
    return %c0_i32, %c0_i32_0 : i32, i32
  }
  func.func @transform_8(%arg0: i32, %arg1: i32) -> (i32, i32, i32) {
    %c0_i32 = arith.constant 0 : i32
    %c0_i32_0 = arith.constant 0 : i32
    return %arg0, %arg1, %c0_i32 : i32, i32, i32
  }
  func.func @transform_9(%arg0: i32, %arg1: i32) -> (i32, i32, i32) {
    %c0_i32 = arith.constant 0 : i32
    %c0_i32_0 = arith.constant 0 : i32
    return %arg0, %arg1, %c0_i32 : i32, i32, i32
  }
}

</mosaic_0001>

<bundles_post_ra>
// kernel: tpu_custom_call.1
= control target key start
LH: loop header
LB: loop body
LE: loop exit
PB: predicated region body
PF: predicated region fallthrough
CT: control target
= control target key end

     0   :  { %s2908_s0 = inlined_call_operand.hbm [shape: f32[2,8,32], index: 0, kind: input, shape index: {}]   ;;  %s2909_s1 = inlined_call_operand.hbm [shape: f32[2,8,32], index: 1, kind: input, shape index: {}]   ;;  %s2910_s2 = inlined_call_operand.hbm [shape: f32[32,32], index: 2, kind: input, shape index: {}]   ;;  %s2911_s3 = inlined_call_operand.hbm [shape: f32[32,64], index: 3, kind: input, shape index: {}]   ;;  %s2912_s4 = inlined_call_operand.vmem [shape: f32[1,32], index: 4, kind: input, shape index: {}]   ;;  %s2913_s5 = inlined_call_operand.vmem [shape: f32[1,64], index: 5, kind: input, shape index: {}]   ;;  %s2914_s6 = inlined_call_operand.hbm [shape: f32[32,32], index: 6, kind: input, shape index: {}]   ;;  %s2915_s7 = inlined_call_operand.vmem [shape: f32[1,32], index: 7, kind: input, shape index: {}]   ;;  %s2916_s8 = inlined_call_operand.hbm [shape: f32[2,8,32], index: 8, kind: output, shape index: {0}]   ;;  %s2917_s9 = inlined_call_operand.hbm [shape: f32[2,8,8], index: 9, kind: output, shape index: {1}]  }
   0x1   :  { %2926 = sst [smem:[#allocation22_spill]] %s2910_s2 }
   0x2   :  { %2927 = sst [smem:[#allocation23_spill]] %s2911_s3 }
   0x3   :  { %2928 = sst [smem:[#allocation24_spill]] %s2914_s6 }
   0x4   :  { %2929 = sst [smem:[#allocation25_spill]] %s2915_s7 }
   0x5   :  { %2930 = sst [smem:[#allocation26_spill]] %s2916_s8 }
   0x6   :  { %2931 = sst [smem:[#allocation27_spill]] %s2917_s9 }
   0x7   :  { %15 = vsyncpa [#allocation3], 0 }
   0x8   :  { %17 = vsyncpa [#allocation3 + $0x1], 0 }
   0x9   :  { %18 = vsyncpa [#allocation6], 0 }
   0xa   :  { %20 = vsyncpa [#allocation6 + $0x1], 0 }
   0xb   :  { %21 = vsyncpa [#allocation9], 0 }
   0xc   :  { %22 = vsyncpa [#allocation4], 0 }
   0xd   :  { %24 = vsyncpa [#allocation4 + $0x1], 0 }
   0xe   :  { %25 = vsyncpa [#allocation13], 0 }
   0xf   :  { %27 = vsyncpa [#allocation13 + $0x1], 0  ;;  %s2458_s30 = smov 0   ;;  %s2460_s10 = smov 0  }
  0x10   :  { %s2462_s11 = smov 0   ;;  %s2464_s12 = smov 0  }
  0x11   :  { %s2466_s13 = smov 0   ;;  %s2468_s14 = smov 0  }
  0x12 LB: > { %2932 = sst [smem:[#allocation20_spill]] %s2367_s30  ;;  %s2489_s15 = sadd.s32 4294967295, %s2387_s14   ;;  %s2387_s14 = sphi %s2468_s14, %s33_s14   ;;  %s2383_s13 = sphi %s2466_s13, %s2963_s13   ;;  %s2379_s12 = sphi %s2464_s12, %s2962_s12   ;;  %s2375_s11 = sphi %s2462_s11, %s2961_s11   ;;  %s2371_s10 = sphi %s2460_s10, %s2960_s10   ;;  %s2367_s30 = sphi %s2458_s30, %s2959_s30  }
  0x13   : > { %s1813_s16 = sadd.s32 4294967294, %s2387_s14   ;;  %p67_p0 = scmp.ne.s32.totalorder %s2371_s10, %s2367_s30 }
  0x14   : > { %p2919_p1 = scmp.eq.s32.totalorder %s2489_s15, 0  ;;  %p251_p3 = scmp.eq.s32.totalorder %s1813_s16, 1 }
  0x15   : > { %p1814_p5 = scmp.ge.s32.totalorder %s2387_s14, 1  ;;  %p286_p7 = scmp.lt.s32.totalorder %s2387_s14, 3 }
  0x16   : > { %p2498_p4 = por %p2919_p1, %p67_p0  ;;  %p2503_p6 = por %p251_p3, %p67_p0 }
  0x17   : > { %p2508_p8 = pnand %p1814_p5, %p286_p7  ;;  %s2389_s20 = smov [#allocation7]  }
  0x18   : > { %s2933_s17 = scalar_select %p2498_p4, 1, 0 }
  0x19   : > { %s2934_s18 = scalar_select %p2503_p6, 1, 0 }
  0x1a   : > { %s2936_s19 = scalar_select %p2508_p8, 1, 0 }
  0x1b   : > { %2935 = sst [smem:[#allocation21_spill]] %s2934_s18  ;;  %s298_s21 = sshll.u32 %s2389_s20, 4  ;;  %s2512_s21 = int_to_ptr.vmem [resolvable:$true] %s298_s21 }
  0x1c   : > { %p2006_p9 = pneg %p2508_p8  ;;  %s2390_s23 = smov [#allocation8]  }
  0x1d   : > { %s311_s24 = sshll.u32 %s2390_s23, 4  ;;  %s2391_s25 = smov [#allocation10]   ;;  %s2523_s24 = int_to_ptr.vmem [resolvable:$true] %s311_s24 }
  0x1e   : > { %p2519_p11 = pnand %p2006_p9, %p2919_p1  ;;  %s2525_s26 = sshll.u32 %s2391_s25, 4  ;;  %s331_s26 = int_to_ptr.vmem [resolvable:$true] %s2525_s26 }
  0x1f   : > { %s2938_s2 = sld [smem:[#allocation22_spill]] }
  0x20   : > { %p2535_p13 = pneg %p2519_p11 }
  0x25   : > { %s2117_s29 = scalar_lea.hbm %s2938_s2, 512 }
  0x26   : > { %p2118_p12 = scmp.ne.s32.totalorder %s2938_s2, %s2117_s29  ;;  %p2124_p5 = scmp.lt.u32.totalorder %s2117_s29, %s2938_s2 }
  0x28   : > { %p2120_p0 = pnand %p2535_p13, %p2118_p12 }
  0x2a   : > { %p2121_p3 = pneg %p2120_p0 }
  0x2c   : > { %p2126_p7 = pnand %p2124_p5, %p2121_p3 }
  0x2e   : > { %2129 = shalt.err (!%p2126_p7)
}
  0x2f   : > { %s2130_s27 = scalar_lea.vmem %s2512_s21, 512  ;;  %p2138_p2 = scmp.lt.s32.totalorder %s2512_s21, %s2512_s21 }
  0x30   : > { %p2131_p9 = scmp.ne.s32.totalorder %s2512_s21, %s2130_s27  ;;  %p2139_p6 = scmp.lt.s32.totalorder %s2130_s27, %s2130_s27 }
  0x32   : > { %p2133_p10 = pnand %p2131_p9, %p2535_p13  ;;  %p2140_p12 = por %p2139_p6, %p2138_p2 }
  0x34   : > { %p2134_p1 = pneg %p2133_p10 }
  0x36   : > { %p2141_p0 = pnand %p2140_p12, %p2134_p1 }
  0x38   : > { %2144 = shalt.err (!%p2141_p0)
}
  0x39   : > { %s2392_s28 = smov 128   ;;  %s2393_s29 = smov 8  }
  0x3a   : > { %2009 = dma.hbm_to_vmem [thread:$0]  (!%p2519_p11), %s2938_s2, 512, %s2512_s21, [#allocation6], %s2392_s28, %s2392_s28, %s2393_s29  }
  0x3b   : > { %s2940_s3 = sld [smem:[#allocation23_spill]] }
  0x41   : > { %s2145_s27 = scalar_lea.hbm %s2940_s3, 512 }
  0x42   : > { %p2146_p1 = scmp.ne.s32.totalorder %s2940_s3, %s2145_s27  ;;  %p2152_p10 = scmp.lt.u32.totalorder %s2145_s27, %s2940_s3 }
  0x44   : > { %p2148_p2 = pnand %p2146_p1, %p2535_p13 }
  0x46   : > { %p2149_p6 = pneg %p2148_p2 }
  0x48   : > { %p2154_p3 = pnand %p2152_p10, %p2149_p6 }
  0x4a   : > { %2157 = shalt.err (!%p2154_p3)
}
  0x4b   : > { %s2158_s21 = scalar_lea.vmem %s2523_s24, 512  ;;  %p2166_p12 = scmp.lt.s32.totalorder %s2523_s24, %s2523_s24 }
  0x4c   : > { %p2159_p5 = scmp.ne.s32.totalorder %s2523_s24, %s2158_s21  ;;  %p2167_p0 = scmp.lt.s32.totalorder %s2158_s21, %s2158_s21 }
  0x4e   : > { %p2161_p7 = pnand %p2159_p5, %p2535_p13  ;;  %p2168_p1 = por %p2167_p0, %p2166_p12 }
  0x50   : > { %p2162_p9 = pneg %p2161_p7 }
  0x52   : > { %p2169_p2 = pnand %p2168_p1, %p2162_p9 }
  0x54   : > { %2172 = shalt.err (!%p2169_p2)
}
  0x55   : > { %2012 = dma.hbm_to_vmem [thread:$0]  (!%p2519_p11), %s2940_s3, 512, %s2523_s24, [#allocation9], %s2392_s28, %s2392_s28, %s2393_s29  }
  0x56   : > { %s2941_s6 = sld [smem:[#allocation24_spill]] }
  0x5c   : > { %s2173_s16 = scalar_lea.hbm %s2941_s6, 512 }
  0x5d   : > { %p2174_p6 = scmp.ne.s32.totalorder %s2941_s6, %s2173_s16  ;;  %p2180_p5 = scmp.lt.u32.totalorder %s2173_s16, %s2941_s6 }
  0x5f   : > { %p2176_p10 = pnand %p2174_p6, %p2535_p13 }
  0x61   : > { %p2177_p3 = pneg %p2176_p10 }
  0x63   : > { %p2182_p7 = pnand %p2180_p5, %p2177_p3 }
  0x65   : > { %2185 = shalt.err (!%p2182_p7)
}
  0x66   : > { %s2186_s21 = scalar_lea.vmem %s331_s26, 512  ;;  %p2194_p1 = scmp.lt.s32.totalorder %s331_s26, %s331_s26 }
  0x67   : > { %p2187_p9 = scmp.ne.s32.totalorder %s331_s26, %s2186_s21  ;;  %p2195_p2 = scmp.lt.s32.totalorder %s2186_s21, %s2186_s21 }
  0x69   : > { %p2189_p12 = pnand %p2187_p9, %p2535_p13  ;;  %p2196_p4 = por %p2195_p2, %p2194_p1 }
  0x6b   : > { %p2190_p0 = pneg %p2189_p12 }
  0x6d   : > { %p2197_p8 = pnand %p2196_p4, %p2190_p0 }
  0x6f   : > { %2200 = shalt.err (!%p2197_p8)
}
  0x70   : > { %2015 = dma.hbm_to_vmem [thread:$0]  (!%p2519_p11), %s2941_s6, 512, %s331_s26, [#allocation9], %s2392_s28, %s2392_s28, %s2393_s29  }
  0x71   : > { %s54_s18 = sadd.s32 1, %s2375_s11  ;;  %s45_s22 = sadd.s32 1, %s2383_s13 }
  0x72   : > { %p61_p4 = scmp.ne.s32.totalorder %s2375_s11, %s2371_s10  ;;  %p47_p8 = scmp.ge.s32.totalorder %s45_s22, 2 }
  0x73   : > { %p62_p13 = scmp.eq.s32.totalorder %s2387_s14, 0  ;;  %p2942_p6 = scmp.eq.s32.totalorder %s2489_s15, 1 }
  0x74   : > { %p2033_p3 = scmp.lt.s32.totalorder %s2387_s14, 2  ;;  %s2965_s22 = smov (%p47_p8, %s45_s22), 0 }
  0x75   : > { %p2614_p10 = por %p2942_p6, %p61_p4  ;;  %p63_p5 = por %p62_p13, %p61_p4 }
  0x76   : > { %s347_s9 = sand.u32 1, %s2375_s11   ;;  %s49_s30 = ssub.s32 %s2383_s13, %s2965_s22 }
  0x77   : > { %s2943_s8 = scalar_select %p2614_p10, 1, 0 }
  0x78   : > { %p52_p11 = scmp.eq.s32.totalorder %s49_s30, 0  ;;  %s2624_s26 = sshll.u32 %s347_s9, 3 }
  0x79   : > { %s1820_s28 = sshll.u32 %s2383_s13, 7  ;;  %s351_s25 = scalar_lea.vmem [#allocation2], %s2624_s26 }
  0x7a   : > { %s2628_s29 = scalar_select %p52_p11, %s2375_s11, %s54_s18  }
  0x7b   : > { %s2633_s23 = scalar_lea.hbm %s2908_s0, %s1820_s28  ;;  %s359_s27 = sshll.u32 %s351_s25, 4  ;;  %s2636_s27 = int_to_ptr.vmem [resolvable:$true] %s359_s27 }
  0x7c   : > { %p2640_p7 = pnand %p2033_p3, %p63_p5  ;;  %s2647_s18 = scalar_lea.hbm %s2909_s1, %s1820_s28 }
  0x7d   : > { %s366_s30 = sand.u32 1, %s2387_s14   ;;  %s348_s16 = scalar_lea.sflag [#allocation3], %s347_s9 }
  0x7e   : > { %s2201_s20 = scalar_lea.hbm %s2633_s23, 128  ;;  %p2203_p12 = pneg %p2640_p7 }
  0x7f   : > { %p2202_p9 = scmp.ne.s32.totalorder %s2633_s23, %s2201_s20  ;;  %s2206_s3 = scalar_lea.hbm %s2908_s0, 256 }
  0x80   : > { %p2207_p2 = scmp.lt.u32.totalorder %s2633_s23, %s2908_s0  ;;  %p2208_p4 = scmp.lt.u32.totalorder %s2206_s3, %s2201_s20 }
  0x81   : > { %p2204_p0 = pnand %p2203_p12, %p2202_p9  ;;  %p2210_p13 = scmp.lt.u32.totalorder %s2201_s20, %s2633_s23 }
  0x82   : > { %p2209_p8 = por %p2208_p4, %p2207_p2 }
  0x83   : > { %p2205_p1 = pneg %p2204_p0 }
  0x84   : > { %p2211_p6 = por %p2210_p13, %p2209_p8 }
  0x86   : > { %p2212_p3 = pnand %p2211_p6, %p2205_p1 }
  0x88   : > { %2215 = shalt.err (!%p2212_p3)
}
  0x89   : > { %s2216_s9 = scalar_lea.vmem %s2636_s27, 128  ;;  %s2394_s2 = smov [#allocation2]  }
  0x8a   : > { %p2217_p5 = scmp.ne.s32.totalorder %s2636_s27, %s2216_s9  ;;  %s2221_s28 = sshll.u32 %s2394_s2, 4  ;;  %s2222_s28 = int_to_ptr.vmem [resolvable:$false] %s2221_s28 }
  0x8b   : > { %s2223_s6 = scalar_lea.vmem %s2222_s28, 256  ;;  %p2224_p0 = scmp.lt.s32.totalorder %s2636_s27, %s2222_s28 }
  0x8c   : > { %p2219_p11 = pnand %p2217_p5, %p2203_p12  ;;  %p2225_p2 = scmp.lt.s32.totalorder %s2223_s6, %s2216_s9 }
  0x8e   : > { %p2220_p9 = pneg %p2219_p11  ;;  %p2226_p4 = por %p2225_p2, %p2224_p0 }
  0x90   : > { %p2227_p8 = pnand %p2226_p4, %p2220_p9 }
  0x92   : > { %2230 = shalt.err (!%p2227_p8)
}
  0x93   : > { %2019 = dma.hbm_to_vmem [thread:$0]  (!%p2640_p7), %s2633_s23, 128, %s2636_s27, %s348_s16  }
  0x94   : > { %s370_s3 = scalar_lea.vmem [#allocation5], %s2624_s26  ;;  %s367_s20 = scalar_lea.sflag [#allocation6], %s366_s30 }
  0x95   : > { %s377_s7 = sshll.u32 %s370_s3, 4  ;;  %s2231_s25 = scalar_lea.hbm %s2647_s18, 128  ;;  %s378_s7 = int_to_ptr.vmem [resolvable:$true] %s377_s7 }
  0x96   : > { %p2232_p1 = scmp.ne.s32.totalorder %s2647_s18, %s2231_s25  ;;  %s2236_s2 = scalar_lea.hbm %s2909_s1, 256 }
  0x97   : > { %p2237_p3 = scmp.lt.u32.totalorder %s2647_s18, %s2909_s1  ;;  %p2238_p5 = scmp.lt.u32.totalorder %s2236_s2, %s2231_s25 }
  0x98   : > { %p2234_p13 = pnand %p2232_p1, %p2203_p12  ;;  %p2240_p9 = scmp.lt.u32.totalorder %s2231_s25, %s2647_s18 }
  0x99   : > { %p2239_p11 = por %p2238_p5, %p2237_p3 }
  0x9a   : > { %p2235_p6 = pneg %p2234_p13 }
  0x9b   : > { %p2241_p0 = por %p2240_p9, %p2239_p11 }
  0x9d   : > { %p2242_p2 = pnand %p2241_p0, %p2235_p6 }
  0x9f   : > { %2245 = shalt.err (!%p2242_p2)
}
  0xa0   : > { %s2246_s26 = scalar_lea.vmem %s378_s7, 128  ;;  %s2395_s23 = smov [#allocation5]  }
  0xa1   : > { %p2247_p4 = scmp.ne.s32.totalorder %s378_s7, %s2246_s26  ;;  %s2251_s27 = sshll.u32 %s2395_s23, 4  ;;  %s2252_s27 = int_to_ptr.vmem [resolvable:$false] %s2251_s27 }
  0xa2   : > { %s2253_s30 = scalar_lea.vmem %s2252_s27, 256  ;;  %p2254_p13 = scmp.lt.s32.totalorder %s378_s7, %s2252_s27 }
  0xa3   : > { %p2249_p8 = pnand %p2247_p4, %p2203_p12  ;;  %p2255_p10 = scmp.lt.s32.totalorder %s2253_s30, %s2246_s26 }
  0xa5   : > { %p2250_p1 = pneg %p2249_p8  ;;  %p2256_p3 = por %p2255_p10, %p2254_p13 }
  0xa7   : > { %p2257_p5 = pnand %p2256_p3, %p2250_p1 }
  0xa9   : > { %2260 = shalt.err (!%p2257_p5)
}
  0xaa   : > { %2022 = dma.hbm_to_vmem [thread:$0]  (!%p2640_p7), %s2647_s18, 128, %s378_s7, %s367_s20  }
  0xab   : > { %p2945_p6 = scmp.ne.s32.totalorder %s2936_s19, 0 }
  0xac   : > { %s2700_s16 = sand.u32 (!%p2945_p6), 1, %s2371_s10   ;;  %p2946_p10 = scmp.ne.s32.totalorder (!%p2945_p6), %s2933_s17, 0 }
  0xad   : > { %386 = sbr.rel (%p2945_p6) target bundleno = 2791 (0xae7), region = 52  ;;  %s2703_s3 = sshll.u32 (!%p2945_p6), %s2700_s16, 3 }
  0xae   : > { %s389_s25 = scalar_lea.sflag (!%p2945_p6), [#allocation3], %s2700_s16  ;;  %s392_s24 = scalar_lea.vmem (!%p2945_p6), [#allocation2], %s2703_s3 }
  0xb4   : > { %2342 = dma.done.wait (%p2946_p10), %s389_s25, 128  }
  0xb5   : > { %2344 = vsyncadd (%p2946_p10), %s389_s25, 4294967168  ;;  %s397_s19 = sand.u32 1, %s2489_s15   ;;  %s401_s18 = scalar_lea.vmem [#allocation5], %s2703_s3 }
  0xb6   : > { %s398_s21 = scalar_lea.sflag [#allocation6], %s397_s19 }
  0xb7   : > { %2346 = dma.done.wait (%p2946_p10), %s398_s21, 128  }
  0xb8   : > { %2348 = vsyncadd (%p2946_p10), %s398_s21, 4294967168  ;;  %p2947_p7 = scmp.eq.s32.totalorder %s2489_s15, 0 }
  0xba   : > { %2350 = dma.done.wait (%p2947_p7), [#allocation6], 512   ;;  %p2948_p12 = pmov %p2947_p7 }
  0xbb   : > { %p2949_p11 = pmov %p2947_p7 }
  0xbc   : > { %2352 = vsyncadd (%p2948_p12), [#allocation6], 4294966784 }
  0xbd   : > { %2354 = dma.done.wait (%p2949_p11), [#allocation9], 1024   ;;  %p2950_p9 = pmov %p2947_p7 }
  0xbe   : > { %v2396_v0 = vmov 0.0|0.0   ;;  %vm2397_vm0 = vmmov 0   ;;  %v2398_v1 = vmov 0.0   ;;  %v546_v2 = vld [vmem:[#allocation8] sm:$0xff]  ;;  %v547_v3 = vld [vmem:[#allocation8 + $0x8] sm:$0xff]  ;;  %v548_v7 = vld [vmem:[#allocation8 + $0x10] sm:$0xff] }
  0xbf   : > { %2356 = vsyncadd (%p2950_p9), [#allocation9], 4294966272  ;;  %1980 = vmatprep.subr.bf16.mxu1 %v2396_v0  ;;  %1974 = vmatprep.subr.bf16.mxu0 %v2396_v0  ;;  %v460_v4 = vld [vmem:[#allocation7] sm:$0xff]  ;;  %v1981_v5 = vpack.c.bf16 %v547_v3, %v546_v2  ;;  %v461_v6 = vld [vmem:[#allocation7 + $0x8] sm:$0xff]  ;;  %vm471_vm1 = vcmask 261120   ;;  %vm634_vm2 = vcmask 64512  }
  0xc0   : > { %1911 = vmatprep.mubr.msk.f32.mxu1 %vm2397_vm0, %v2398_v1  ;;  %1900 = vmatprep.mubr.msk.f32.mxu0 %vm2397_vm0, %v2398_v1  ;;  %v549_v8 = vld [vmem:[#allocation8 + $0x18] sm:$0xff]  ;;  %v1975_v9 = vpack.c.bf16 %v461_v6, %v460_v4  ;;  %v462_v10 = vld [vmem:[#allocation7 + $0x10] sm:$0xff]  ;;  %v458_v15 = vld [vmem:[%s392_s24] sm:$0xff]  ;;  %s2399_s9 = smov 120   ;;  %s2400_s2 = smov 96  }
  0xc1   : > { %v463_v11 = vld [vmem:[#allocation7 + $0x18] sm:$0xff]  ;;  %1982 = vmatpush3.bf16.msra.mxu1 %v1981_v5  ;;  %v1984_v12 = vpack.c.bf16 %v549_v8, %v548_v7  ;;  %v1833_v16 = vld [vmem:[%s2913_s5] ss:$0 sm:$0xff]  ;;  %s2401_s28 = smov 88   ;;  %s2402_s6 = smov 112   ;;  %v631_v50 = vld [vmem:[#allocation10 + $0x8] sm:$0xff] }
  0xc2   : > { %1976 = vmatpush3.bf16.msra.mxu0 %v1975_v9  ;;  %1983 = vmatprep.subr.bf16.mxu1 %v2396_v0  ;;  %v1978_v13 = vpack.c.bf16 %v463_v11, %v462_v10  ;;  %v459_v14 = vld [vmem:[%s401_s18] sm:$0xff]  ;;  %v1831_v17 = vld [vmem:[%s2912_s4] ss:$0 sm:$0xff]  ;;  %s2403_s26 = smov 80   ;;  %s2404_s23 = smov 104  }
  0xc3   : > { %1977 = vmatprep.subr.bf16.mxu0 %v2396_v0  ;;  %v630_v58 = vld [vmem:[#allocation10] sm:$0xff]  ;;  %s2405_s27 = smov 72   ;;  %s457_s30 = scalar_lea.vmem [#allocation12], %s2703_s3 }
  0xc4   : > { %s1854_s25 = sshll.u32 %s2379_s12, 7  ;;  %s2951_s21 = sld [smem:[#allocation27_spill]] }
  0xc5   : > { %1985 = vmatpush3.bf16.msra.mxu1 %v1984_v12  ;;  %s1648_s15 = sshll.u32 %s457_s30, 4  ;;  %s1620_s17 = scalar_lea.sflag [#allocation13], %s2700_s16  ;;  %s1649_s15 = int_to_ptr.vmem [resolvable:$true] %s1648_s15 }
  0xc6   : > { %1979 = vmatpush3.bf16.msra.mxu0 %v1978_v13  ;;  %1919 = vmatprep.subr.mxu1 %v2398_v1  ;;  %s2261_s7 = scalar_lea.vmem %s1649_s15, 128  ;;  %p2952_p2 = scmp.ne.s32.totalorder %s2943_s8, 0 }
  0xc7   : > { %1914 = vmatprep.subr.mxu0 %v2398_v1  ;;  %p2262_p0 = scmp.ne.s32.totalorder %s1649_s15, %s2261_s7  ;;  %s2406_s20 = smov [#allocation12]  }
  0xc8   : > { %1912 = vmatmul.mubr.msk.f32.vlgmr.msra.gmra.mrb[0].mxu1 %vm471_vm1, %v459_v14 }
  0xc9   : > { %1901 = vmatmul.mubr.msk.f32.vlgmr.msra.gmra.mrb[0].mxu0 %vm471_vm1, %v458_v15  ;;  %1921 = vmatprep.mubr.msk.f32.mxu1 %vm2397_vm0, %v2398_v1  ;;  %p2263_p4 = pnand %p2262_p0, %p2952_p2 }
  0xca   : > { %1916 = vmatprep.mubr.msk.f32.mxu0 %vm2397_vm0, %v2398_v1  ;;  %s2829_s18 = scalar_lea.hbm %s2951_s21, %s1854_s25 }
  0xcb   : > { %p2264_p8 = pneg %p2263_p4 }
 0x19b   : > { %v626_v18 = vpop.f32.mrb[0].mxu1 }
 0x19c   : > { %v2747_v19 = vadd.f32 %v1833_v16, %v626_v18  ;;  %v541_v20 = vpop.f32.mrb[0].mxu0  ;;  %v1913_v21 = vpop.f32.mrb[1].mxu1 }
 0x19d   : > { %v542_v22 = vadd.f32 %v1831_v17, %v541_v20  ;;  %v1902_v23 = vpop.f32.mrb[1].mxu0 }
 0x19e   : > { %804 = vrot.lane.b32.xlu0 %v2747_v19, %s2399_s9  ;;  %1915 = vmatpush3.xpose.msk.msra.mxu0 %vm634_vm2, %v2747_v19 }
 0x19f   : > { %v2752_v24 = vmul.f32 0.35355338, %v542_v22  ;;  %1924 = vmatprep.subr.mxu0 %v2398_v1 }
 0x1a1   : > { %1917 = vmatmul.mubr.msk.f32.vlgmr.msra.gmra.mrb[2].mxu0 %vm634_vm2, %v2752_v24 }
 0x1a2   : > { %802 = vrot.lane.b32.xlu0 %v2752_v24, %s2399_s9  ;;  %1926 = vmatprep.mubr.msk.f32.mxu0 %vm2397_vm0, %v2398_v1  ;;  %s2265_s9 = sshll.u32 %s2406_s20, 4  ;;  %s2266_s9 = int_to_ptr.vmem [resolvable:$false] %s2265_s9 }
 0x1a3   : > { %p2268_p1 = scmp.lt.s32.totalorder %s1649_s15, %s2266_s9 }
 0x210   : > { %v805_v25 = vpop.permute.xlu0 %804 }
 0x211   : > { %1925 = vmatpush3.xpose.msk.msra.mxu0 %vm634_vm2, %v805_v25 }
 0x212   : > { %1934 = vmatprep.subr.mxu0 %v2398_v1 }
 0x214   : > { %v803_v26 = vpop.permute.xlu0 %802 }
 0x215   : > { %1927 = vmatmul.mubr.msk.f32.vlgmr.msra.gmra.mrb[4].mxu0 %vm634_vm2, %v803_v26 }
 0x216   : > { %1936 = vmatprep.mubr.msk.f32.mxu0 %vm2397_vm0, %v2398_v1  ;;  %1935 = vmatpush3.msra.mxu0 %v631_v50 }
 0x217   : > { %1944 = vmatprep.subr.mxu0 %v2398_v1 }
 0x274   : > { %v707_v27 = vpop.f32.mrb[2].mxu0 }
 0x275   : > { %v1918_v28 = vpop.f32.mrb[3].mxu0  ;;  %v711_v29 = vsel %vm634_vm2, %v707_v27, -inf }
 0x276   : > { %712 = vmax.xlane.f32.xlu1 %v711_v29 }
 0x2e8   : > { %v876_v30 = vpop.f32.mrb[4].mxu0 }
 0x2e9   : > { %v1928_v31 = vpop.f32.mrb[5].mxu0  ;;  %v880_v32 = vsel %vm634_vm2, %v876_v30, -inf }
 0x2ea   : > { %881 = vmax.xlane.f32.xlu1 %v880_v32 }
 0x2fb   : > { %726 = vrot.lane.b32.xlu1 %v2747_v19, %s2400_s2  ;;  %s2267_s2 = scalar_lea.vmem %s2266_s9, 256 }
 0x2fc   : > { %p2269_p13 = scmp.lt.s32.totalorder %s2267_s2, %s2261_s7 }
 0x2fe   : > { %p2270_p3 = por %p2269_p13, %p2268_p1 }
 0x300   : > { %p2271_p5 = pnand %p2270_p3, %p2264_p8 }
 0x303   : > { %v713_v33 = vpop.xlane.xlu1 %712 }
 0x304   : > { %v714_v34 = vsub.f32 %v707_v27, %v713_v33  ;;  %v632_v27 = vld [vmem:[#allocation10 + $0x10] sm:$0xff] }
 0x306   : > { %v715_v35 = vmul.f32 1.442695, %v714_v34 }
 0x308   : > { %2101 = vpow2.f32 %v715_v35 }
 0x312   : > { %v2102_v36 = vpop.eup %2101 }
 0x313   : > { %v717_v37 = vsel %vm634_vm2, %v2102_v36, 0.0 }
 0x314   : > { %718 = vadd.xlane.f32.xlu0 %v717_v37 }
 0x377   : > { %v882_v38 = vpop.xlane.xlu1 %881 }
 0x378   : > { %v883_v39 = vsub.f32 %v876_v30, %v882_v38  ;;  %v633_v38 = vld [vmem:[#allocation10 + $0x18] sm:$0xff] }
 0x37a   : > { %v884_v40 = vmul.f32 1.442695, %v883_v39 }
 0x37b   : > { %v727_v41 = vpop.permute.xlu1 %726 }
 0x37c   : > { %2103 = vpow2.f32 %v884_v40  ;;  %1920 = vmatpush3.msra.mxu1 %v727_v41 }
 0x37d   : > { %1929 = vmatprep.subr.mxu1 %v2398_v1 }
 0x386   : > { %v2104_v42 = vpop.eup %2103 }
 0x387   : > { %v886_v43 = vsel %vm634_vm2, %v2104_v42, 0.0 }
 0x388   : > { %887 = vadd.xlane.f32.xlu1 %v886_v43 }
 0x399   : > { %895 = vrot.lane.b32.xlu1 %v2747_v19, %s2401_s28 }
 0x39d   : > { %1119 = vrot.lane.b32.xlu1 %v2747_v19, %s2402_s6 }
 0x3a1   : > { %v719_v44 = vpop.xlane.xlu0 %718  ;;  %1117 = vrot.lane.b32.xlu1 %v2752_v24, %s2402_s6 }
 0x3a2   : > { %2105 = vrcp.f32 %v719_v44 }
 0x3ac   : > { %v2106_v45 = vpop.eup %2105 }
 0x3ad   : > { %v721_v46 = vmul.f32 %v2106_v45, %v719_v44 }
 0x3af   : > { %v722_v47 = vsub.f32 2.0, %v721_v46 }
 0x3b1   : > { %v723_v48 = vmul.f32 %v2106_v45, %v722_v47 }
 0x3b3   : > { %v2774_v49 = vmul.f32 %v2102_v36, %v723_v48 }
 0x3b5   : > { %1922 = vmatmul.mubr.msk.f32.vlgmr.msra.gmra.mrb[2].mxu1 %vm634_vm2, %v2774_v49 }
 0x3b6   : > { %1931 = vmatprep.mubr.msk.f32.mxu1 %vm2397_vm0, %v2398_v1 }
 0x415   : > { %v888_v51 = vpop.xlane.xlu1 %887 }
 0x416   : > { %2107 = vrcp.f32 %v888_v51 }
 0x419   : > { %v896_v52 = vpop.permute.xlu1 %895 }
 0x41a   : > { %1930 = vmatpush3.msra.mxu1 %v896_v52 }
 0x41b   : > { %1939 = vmatprep.subr.mxu1 %v2398_v1 }
 0x41d   : > { %v1120_v61 = vpop.permute.xlu1 %1119 }
 0x420   : > { %v2108_v53 = vpop.eup %2107 }
 0x421   : > { %v890_v54 = vmul.f32 %v2108_v53, %v888_v51  ;;  %v1118_v0 = vpop.permute.xlu1 %1117 }
 0x423   : > { %v891_v55 = vsub.f32 2.0, %v890_v54 }
 0x425   : > { %v892_v56 = vmul.f32 %v2108_v53, %v891_v55 }
 0x427   : > { %v893_v57 = vmul.f32 %v2104_v42, %v892_v56 }
 0x429   : > { %1932 = vmatmul.mubr.msk.f32.vlgmr.msra.gmra.mrb[4].mxu1 %vm634_vm2, %v893_v57  ;;  %v894_v23 = vadd.f32 %v893_v57, %v2774_v49 }
 0x42a   : > { %1940 = vmatpush3.msra.mxu1 %v630_v58  ;;  %1941 = vmatprep.mubr.msk.f32.mxu1 %vm2397_vm0, %v2398_v1 }
 0x42b   : > { %1949 = vmatprep.subr.mxu1 %v2398_v1 }
 0x488   : > { %v798_v59 = vpop.f32.mrb[2].mxu1 }
 0x489   : > { %v1923_v60 = vpop.f32.mrb[3].mxu1  ;;  %1942 = vmatmul.mubr.msk.f32.vlgmr.msra.gmra.mrb[6].mxu1 %vm634_vm2, %v798_v59 }
 0x48a   : > { %1951 = vmatprep.mubr.msk.f32.mxu1 %vm2397_vm0, %v2398_v1 }
 0x4fc   : > { %v967_v62 = vpop.f32.mrb[4].mxu1 }
 0x4fd   : > { %v1933_v63 = vpop.f32.mrb[5].mxu1  ;;  %1937 = vmatmul.mubr.msk.f32.vlgmr.msra.gmra.mrb[6].mxu0 %vm634_vm2, %v967_v62 }
 0x4fe   : > { %1945 = vmatpush3.xpose.msk.msra.mxu0 %vm634_vm2, %v1120_v61  ;;  %1946 = vmatprep.mubr.msk.f32.mxu0 %vm2397_vm0, %v2398_v1 }
 0x4ff   : > { %1954 = vmatprep.subr.mxu0 %v2398_v1 }
 0x501   : > { %1947 = vmatmul.mubr.msk.f32.vlgmr.msra.gmra.mrb[8].mxu0 %vm634_vm2, %v1118_v0 }
 0x502   : > { %1956 = vmatprep.mubr.msk.f32.mxu0 %vm2397_vm0, %v2398_v1  ;;  %1955 = vmatpush3.msra.mxu0 %v632_v27 }
 0x503   : > { %1964 = vmatprep.subr.mxu0 %v2398_v1 }
 0x55c   : > { %v1113_v2 = vpop.f32.mrb[6].mxu1 }
 0x55d   : > { %v1943_v3 = vpop.f32.mrb[7].mxu1 }
 0x5d0   : > { %v1040_v4 = vpop.f32.mrb[6].mxu0 }
 0x5d1   : > { %v1114_v5 = vadd.f32 %v1113_v2, %v1040_v4  ;;  %v1938_v6 = vpop.f32.mrb[7].mxu0 }
 0x5d4   : > { %v1191_v7 = vpop.f32.mrb[8].mxu0 }
 0x5d5   : > { %v1948_v8 = vpop.f32.mrb[9].mxu0  ;;  %v1195_v9 = vsel %vm634_vm2, %v1191_v7, -inf }
 0x5d6   : > { %1196 = vmax.xlane.f32.xlu0 %v1195_v9 }
 0x5ec   : > { %1210 = vrot.lane.b32.xlu0 %v2747_v19, %s2403_s26 }
 0x5f0   : > { %1362 = vrot.lane.b32.xlu0 %v2747_v19, %s2404_s23 }
 0x5f4   : > { %1360 = vrot.lane.b32.xlu0 %v2752_v24, %s2404_s23 }
 0x663   : > { %v1197_v10 = vpop.xlane.xlu0 %1196 }
 0x664   : > { %v1198_v11 = vsub.f32 %v1191_v7, %v1197_v10 }
 0x666   : > { %v1199_v12 = vmul.f32 1.442695, %v1198_v11 }
 0x667   : > { %v1211_v13 = vpop.permute.xlu0 %1210 }
 0x668   : > { %2109 = vpow2.f32 %v1199_v12  ;;  %1950 = vmatpush3.msra.mxu1 %v1211_v13 }
 0x669   : > { %1959 = vmatprep.subr.mxu1 %v2398_v1 }
 0x66b   : > { %v1363_v22 = vpop.permute.xlu0 %1362 }
 0x66f   : > { %v1361_v26 = vpop.permute.xlu0 %1360 }
 0x672   : > { %v2110_v14 = vpop.eup %2109 }
 0x673   : > { %v1201_v15 = vsel %vm634_vm2, %v2110_v14, 0.0 }
 0x674   : > { %1202 = vadd.xlane.f32.xlu1 %v1201_v15 }
 0x701   : > { %v1203_v16 = vpop.xlane.xlu1 %1202 }
 0x702   : > { %2111 = vrcp.f32 %v1203_v16 }
 0x70c   : > { %v2112_v17 = vpop.eup %2111 }
 0x70d   : > { %v1205_v18 = vmul.f32 %v2112_v17, %v1203_v16 }
 0x70f   : > { %v1206_v20 = vsub.f32 2.0, %v1205_v18 }
 0x711   : > { %v1207_v21 = vmul.f32 %v2112_v17, %v1206_v20 }
 0x713   : > { %v1208_v24 = vmul.f32 %v2110_v14, %v1207_v21 }
 0x715   : > { %v1209_v25 = vadd.f32 %v1208_v24, %v894_v23  ;;  %1952 = vmatmul.mubr.msk.f32.vlgmr.msra.gmra.mrb[8].mxu1 %vm634_vm2, %v1208_v24 }
 0x716   : > { %1960 = vmatpush3.xpose.msk.msra.mxu1 %vm634_vm2, %v1363_v22  ;;  %1961 = vmatprep.mubr.msk.f32.mxu1 %vm2397_vm0, %v2398_v1 }
 0x717   : > { %1969 = vmatprep.subr.mxu1 %v2398_v1 }
 0x719   : > { %1962 = vmatmul.mubr.msk.f32.vlgmr.msra.gmra.mrb[10].mxu1 %vm634_vm2, %v1361_v26 }
 0x71a   : > { %1971 = vmatprep.mubr.msk.f32.mxu1 %vm2397_vm0, %v2398_v1  ;;  %1970 = vmatpush3.msra.mxu1 %v633_v38 }
 0x7e8   : > { %v1282_v28 = vpop.f32.mrb[8].mxu1 }
 0x7e9   : > { %v1953_v29 = vpop.f32.mrb[9].mxu1  ;;  %1957 = vmatmul.mubr.msk.f32.vlgmr.msra.gmra.mrb[10].mxu0 %vm634_vm2, %v1282_v28 }
 0x7ea   : > { %1966 = vmatprep.mubr.msk.f32.mxu0 %vm2397_vm0, %v2398_v1 }
 0x7ec   : > { %v1434_v30 = vpop.f32.mrb[10].mxu1 }
 0x7ed   : > { %v1963_v31 = vpop.f32.mrb[11].mxu1  ;;  %v1438_v32 = vsel %vm634_vm2, %v1434_v30, -inf }
 0x7ee   : > { %1439 = vmax.xlane.f32.xlu0 %v1438_v32 }
 0x87b   : > { %v1440_v33 = vpop.xlane.xlu0 %1439 }
 0x87c   : > { %v1441_v34 = vsub.f32 %v1434_v30, %v1440_v33 }
 0x87e   : > { %v1442_v35 = vmul.f32 1.442695, %v1441_v34 }
 0x880   : > { %2113 = vpow2.f32 %v1442_v35 }
 0x88a   : > { %v2114_v36 = vpop.eup %2113 }
 0x88b   : > { %v1444_v37 = vsel %vm634_vm2, %v2114_v36, 0.0 }
 0x88c   : > { %1445 = vadd.xlane.f32.xlu1 %v1444_v37 }
 0x89d   : > { %1453 = vrot.lane.b32.xlu1 %v2747_v19, %s2405_s27 }
 0x8bc   : > { %v1355_v1 = vpop.f32.mrb[10].mxu0 }
 0x8bd   : > { %v1359_v39 = vadd.f32 %v1355_v1, %v1114_v5  ;;  %v1958_v40 = vpop.f32.mrb[11].mxu0 }
 0x919   : > { %v1446_v41 = vpop.xlane.xlu1 %1445 }
 0x91a   : > { %2115 = vrcp.f32 %v1446_v41 }
 0x91d   : > { %v1454_v42 = vpop.permute.xlu1 %1453 }
 0x91e   : > { %1965 = vmatpush3.msra.mxu0 %v1454_v42 }
 0x924   : > { %v2116_v43 = vpop.eup %2115 }
 0x925   : > { %v1448_v44 = vmul.f32 %v2116_v43, %v1446_v41 }
 0x927   : > { %v1449_v45 = vsub.f32 2.0, %v1448_v44 }
 0x929   : > { %v1450_v46 = vmul.f32 %v2116_v43, %v1449_v45 }
 0x92b   : > { %v1451_v47 = vmul.f32 %v2114_v36, %v1450_v46 }
 0x92d   : > { %v1452_v19 = vadd.f32 %v1451_v47, %v1209_v25  ;;  %1967 = vmatmul.mubr.msk.f32.vlgmr.msra.gmra.mrb[12].mxu0 %vm634_vm2, %v1451_v47 }
 0x92f   : > { %v1612_v48 = vmul.f32 0.25, %v1452_v19 }
 0x931   : > { %1613 = vst.msk [vmem:[%s457_s30] sm:$0xff] %vm634_vm2, %v1612_v48 }
 0xa00   : > { %v1525_v49 = vpop.f32.mrb[12].mxu0 }
 0xa01   : > { %v1968_v50 = vpop.f32.mrb[13].mxu0  ;;  %1972 = vmatmul.mubr.msk.f32.vlgmr.msra.gmra.mrb[12].mxu1 %vm634_vm2, %v1525_v49 }
 0xa02   : > { %2274 = shalt.err (!%p2271_p5)
}
 0xa03   : > { %s2275_s28 = scalar_lea.hbm %s2829_s18, 128  ;;  %s2279_s23 = scalar_lea.hbm %s2951_s21, 256 }
 0xa04   : > { %p2276_p6 = scmp.ne.s32.totalorder %s2829_s18, %s2275_s28  ;;  %p2280_p12 = scmp.lt.u32.totalorder %s2829_s18, %s2951_s21 }
 0xa05   : > { %p2281_p11 = scmp.lt.u32.totalorder %s2279_s23, %s2275_s28  ;;  %p2283_p0 = scmp.lt.u32.totalorder %s2275_s28, %s2829_s18 }
 0xa06   : > { %p2277_p10 = pnand %p2276_p6, %p2952_p2 }
 0xa07   : > { %p2282_p9 = por %p2281_p11, %p2280_p12 }
 0xa08   : > { %p2278_p7 = pneg %p2277_p10 }
 0xa09   : > { %p2284_p4 = por %p2283_p0, %p2282_p9 }
 0xa0b   : > { %p2285_p8 = pnand %p2284_p4, %p2278_p7 }
 0xa0d   : > { %2288 = shalt.err (!%p2285_p8)
}
 0xa0e   : > { %2003 = dma.vmem_to_hbm [thread:$0]  (%p2952_p2), %s1649_s15, 128, %s2829_s18, %s1620_s17  }
 0xa0f   : > { %s2953_s7 = sld [smem:[#allocation25_spill]]  ;;  %s450_s20 = scalar_lea.vmem [#allocation11], %s2703_s3 }
 0xa10   : > { %s1634_s9 = sshll.u32 %s450_s20, 4  ;;  %s2954_s6 = sld [smem:[#allocation26_spill]]  ;;  %s2860_s9 = int_to_ptr.vmem [resolvable:$true] %s1634_s9 }
 0xa11   : > { %s1615_s18 = scalar_lea.sflag [#allocation4], %s2700_s16  ;;  %s2289_s15 = scalar_lea.vmem %s2860_s9, 128 }
 0xa12   : > { %p2290_p1 = scmp.ne.s32.totalorder %s2860_s9, %s2289_s15  ;;  %s2407_s3 = smov [#allocation11]  }
 0xa13   : > { %s2293_s12 = sshll.u32 %s2407_s3, 4  ;;  %s2294_s12 = int_to_ptr.vmem [resolvable:$false] %s2293_s12 }
 0xa14   : > { %p2291_p13 = pnand %p2290_p1, %p2952_p2  ;;  %s2295_s17 = scalar_lea.vmem %s2294_s12, 256 }
 0xa15   : > { %v1851_v52 = vld [vmem:[%s2953_s7] ss:$0 sm:$0xff]  ;;  %p2296_p5 = scmp.lt.s32.totalorder %s2860_s9, %s2294_s12  ;;  %p2297_p6 = scmp.lt.s32.totalorder %s2295_s17, %s2289_s15 }
 0xa16   : > { %s2858_s26 = scalar_lea.hbm %s2954_s6, %s1854_s25  ;;  %p2292_p3 = pneg %p2291_p13 }
 0xa17   : > { %p2298_p10 = por %p2297_p6, %p2296_p5 }
 0xa19   : > { %p2299_p7 = pnand %p2298_p10, %p2292_p3 }
 0xad4   : > { %v1598_v51 = vpop.f32.mrb[12].mxu1 }
 0xad5   : > { %v1602_v53 = vadd.f32 %v1598_v51, %v1359_v39  ;;  %v1973_v54 = vpop.f32.mrb[13].mxu1 }
 0xad7   : > { %v1610_v55 = vadd.f32 %v1851_v52, %v1602_v53 }
 0xad9   : > { %1611 = vst.msk [vmem:[%s450_s20] sm:$0xff] %vm471_vm1, %v1610_v55 }
 0xada   : > { %2302 = shalt.err (!%p2299_p7)
}
 0xadb   : > { %s2303_s16 = scalar_lea.hbm %s2858_s26, 128  ;;  %s2307_s27 = scalar_lea.hbm %s2954_s6, 256 }
 0xadc   : > { %p2304_p12 = scmp.ne.s32.totalorder %s2858_s26, %s2303_s16  ;;  %p2308_p0 = scmp.lt.u32.totalorder %s2858_s26, %s2954_s6 }
 0xadd   : > { %p2309_p4 = scmp.lt.u32.totalorder %s2307_s27, %s2303_s16  ;;  %p2311_p1 = scmp.lt.u32.totalorder %s2303_s16, %s2858_s26 }
 0xade   : > { %p2305_p11 = pnand %p2304_p12, %p2952_p2 }
 0xadf   : > { %p2310_p8 = por %p2309_p4, %p2308_p0 }
 0xae0   : > { %p2306_p9 = pneg %p2305_p11 }
 0xae1   : > { %p2312_p13 = por %p2311_p1, %p2310_p8 }
 0xae3   : > { %p2313_p3 = pnand %p2312_p13, %p2306_p9 }
 0xae5   : > { %2316 = shalt.err (!%p2313_p3)
}
 0xae6   : > { %2002 = dma.vmem_to_hbm [thread:$0]  (%p2952_p2), %s2860_s9, 128, %s2858_s26, %s1615_s18  }
 0xae7 PF: > { %s2955_s19 = sld [smem:[#allocation20_spill]]  ;;  %s2956_s7 = sld [smem:[#allocation21_spill]] }
 0xae8   : > { %p2958_p6 = scmp.ge.s32.totalorder %s2387_s14, 2 }
 0xaed   : > { %s1660_s20 = sand.u32 1, %s2955_s19   ;;  %p2957_p5 = scmp.ne.s32.totalorder %s2956_s7, 0 }
 0xaee   : > { %s1661_s2 = scalar_lea.sflag [#allocation4], %s1660_s20 }
 0xaef   : > { %p2024_p10 = pnand %p2958_p6, %p2957_p5 }
 0xaf1   : > { %2358 = dma.done.wait (!%p2024_p10), %s1661_s2, 128  }
 0xaf2   : > { %2360 = vsyncadd (!%p2024_p10), %s1661_s2, 4294967168  ;;  %s1670_s28 = scalar_lea.sflag [#allocation13], %s1660_s20 }
 0xaf3   : > { %2362 = dma.done.wait (!%p2024_p10), %s1670_s28, 128  }
 0xaf4   : > { %2364 = vsyncadd (!%p2024_p10), %s1670_s28, 4294967168  ;;  %s33_s14 = sadd.s32 1, %s2387_s14   ;;  %s2959_s30 = smov %s2371_s10 }
 0xaf5   : > { %p30_p7 = scmp.ge.s32.totalorder %s33_s14, 4   ;;  %s2960_s10 = smov %s2375_s11 }
 0xaf6   : > { %s2961_s11 = smov %s2628_s29  ;;  %s2962_s12 = smov %s2383_s13 }
 0xaf7   : > { %s2963_s13 = smov %s2965_s22  ;;  %32 = sbr.rel (!%p30_p7) target bundleno = 18 (0x12), region = 139 }
 0xafe   :  { %1675 = vsyncpa [#allocation3], 1 }
 0xaff   :  { %1677 = vsyncpa [#allocation3 + $0x1], 1 }
 0xb00   :  { %1678 = vsyncpa [#allocation6], 1 }
 0xb01   :  { %1680 = vsyncpa [#allocation6 + $0x1], 1 }
 0xb02   :  { %1681 = vsyncpa [#allocation9], 1 }
 0xb03   :  { %1682 = vsyncpa [#allocation4], 1 }
 0xb04   :  { %1684 = vsyncpa [#allocation4 + $0x1], 1 }
 0xb05   :  { %1685 = vsyncpa [#allocation13], 1 }
 0xb06   :  { %1687 = vsyncpa [#allocation13 + $0x1], 1 }

</bundles_post_ra>
